<compile_context>
chip_gen: v5e
topology: v5e:2x2
jax: 0.10.0
libtpu: 0.0.40
codegen_flags: <defaults>
</compile_context>

<pallas_src>
import jax
import jax.numpy as jnp
from jax.experimental import pallas as pl
from jax.experimental.pallas import tpu as pltpu

_LANES = 128  # TPU vreg lane width; block last dim must be a multiple of 128.


def _copy_kernel(x_ref, o_ref):
    # Pure copy: the only "compute" a no-op forward admits.
    o_ref[...] = x_ref[...]


def _sublane_multiple(dtype) -> int:
    """Sublane alignment requirement: 8 for 32-bit, 16 for 16-bit, 32 for 8-bit."""
    itemsize = jnp.dtype(dtype).itemsize
    return max(8, 32 // itemsize)


def identity_pallas(
    x,
    *,
    target_tile_rows: int = 1024,
    max_lane_width: int = 4096,
    vmem_budget_bytes: int = 12 << 20,
):
    """Lane-dense, tiled Pallas copy of `x` (template for future CellNAS compute).

    The tensor is flattened and viewed as [rows, lane_width] with lane_width a
    wide multiple of 128 (up to 4096), so every DMA is a long contiguous
    stripe and every store is a full-width unmasked vst.  Rows are tiled along
    a "parallel" grid axis.  The tile is sized so that the double-buffered
    input + output blocks (4 * tile_bytes) stay under `vmem_budget_bytes`
    (default 12 MiB: safe under v5e's 16 MiB scoped-VMEM default as well as
    v6e/v7x's 32 MiB default).  Raise the budget together with
    pltpu.CompilerParams(vmem_limit_bytes=...) if you want bigger blocks on
    v6e (128 MiB physical) -- but note v7x has only 64 MiB physical VMEM.
    Arbitrary sizes are handled by padding up to a whole number of tiles and
    slicing the result back, so awkward shapes never force tiny tiles.
    """
    orig_shape = x.shape
    dtype = x.dtype
    itemsize = jnp.dtype(dtype).itemsize
    total = x.size
    if total == 0:
        return x

    sub = _sublane_multiple(dtype)

    # Wide, lane-dense last dim: largest power-of-two multiple of 128 that is
    # <= max_lane_width and still leaves at least `sub` rows of real data.
    lane_width = _LANES
    while lane_width * 2 <= max_lane_width and lane_width * 2 * sub <= total:
        lane_width *= 2

    rows = pl.cdiv(total, lane_width)

    # Tile rows sized against double-buffered VMEM (input + output blocks):
    #   4 * tile_rows * lane_width * itemsize <= vmem_budget_bytes.
    max_rows_by_vmem = vmem_budget_bytes // (4 * lane_width * itemsize)
    max_rows_by_vmem = max(sub, (max_rows_by_vmem // sub) * sub)
    tile_rows = min(target_tile_rows, max_rows_by_vmem)
    tile_rows = max(sub, (tile_rows // sub) * sub)
    # Don't tile beyond the (sublane-aligned) data extent.
    rows_aligned = pl.cdiv(rows, sub) * sub
    tile_rows = min(tile_rows, rows_aligned)

    num_tiles = pl.cdiv(rows, tile_rows)
    rows_padded = num_tiles * tile_rows
    padded_total = rows_padded * lane_width

    flat = x.reshape(-1)
    if padded_total != total:
        flat = jnp.pad(flat, (0, padded_total - total))
    x2d = flat.reshape(rows_padded, lane_width)

    out2d = pl.pallas_call(
        _copy_kernel,
        out_shape=jax.ShapeDtypeStruct(x2d.shape, x2d.dtype),
        grid=(num_tiles,),
        in_specs=[pl.BlockSpec((tile_rows, lane_width), lambda i: (i, 0))],
        out_specs=pl.BlockSpec((tile_rows, lane_width), lambda i: (i, 0)),
        compiler_params=pltpu.CompilerParams(
            dimension_semantics=("parallel",),
        ),
        # Pure bandwidth op: read + write every byte once.
        cost_estimate=pl.CostEstimate(
            flops=0,
            transcendentals=0,
            bytes_accessed=2 * padded_total * itemsize,
        ),
    )(x2d)

    if padded_total != total:
        return out2d.reshape(-1)[:total].reshape(orig_shape)
    return out2d.reshape(orig_shape)


class CellNAS:
    """JAX mirror of the (empty) PyTorch CellNAS module."""

    def __init__(self):
        # The reference __init__ declares no parameters.
        pass

    def forward(self):
        # The reference forward is `pass` -> returns None.  Per the perf
        # review, the no-op path launches no kernel at all.
        return None

    __call__ = forward


def cell_nas_forward():
    """Exact-semantics wrapper: CellNAS().forward() -> None."""
    return CellNAS()()


if __name__ == "__main__":
    # Exact-semantics check: the module's forward returns None (no kernel run).
    result = cell_nas_forward()
    assert result is None

    # Demo launch of the reviewed Pallas copy template with deterministic
    # small inputs (NCHW), to prove the kernel compiles and runs on TPU.
    key = jax.random.PRNGKey(0)
    x = jax.random.normal(key, (2, 4, 16, 16), dtype=jnp.float32)
    # 2*4*16*16 = 2048 elems -> lane_width=256, rows=8, tile=(8,256), grid=(1,).
    # Real workloads get (up to) 1024-row x 4096-lane tiles (HBM-bound regime).
    y = identity_pallas(x)
    jax.block_until_ready(y)
    assert y.shape == x.shape and y.dtype == x.dtype
    assert bool(jnp.allclose(y, x))

    # Larger, non-divisible shape to exercise padding + multi-block grid.
    x_big = jax.random.normal(jax.random.PRNGKey(1), (3, 5, 33, 65), dtype=jnp.float32)
    y_big = identity_pallas(x_big, target_tile_rows=64, max_lane_width=512)
    jax.block_until_ready(y_big)
    assert bool(jnp.allclose(y_big, x_big))

    print("KERNEL_OK")
</pallas_src>

<mosaic_0001>
module attributes {stable_mosaic.version = 11 : i64} {
  func.func @_copy_kernel(%arg0: i32, %arg1: memref<8x256xf32, #tpu.memory_space<vmem>>, %arg2: memref<8x256xf32, #tpu.memory_space<vmem>>) attributes {dimension_semantics = [#tpu.dimension_semantics<parallel>], iteration_bounds = array<i64: 1>, scalar_prefetch = 0 : i64, scratch_operands = 0 : i64, tpu.core_type = #tpu.core_type<tc>, window_params = [{transform_indices = @transform_0, window_bounds = array<i64: 8, 256>}, {transform_indices = @transform_1, window_bounds = array<i64: 8, 256>}]} {
    %c0 = arith.constant 0 : index
    %c0_0 = arith.constant 0 : index
    %0 = vector.load %arg1[%c0, %c0_0] : memref<8x256xf32, #tpu.memory_space<vmem>>, vector<8x256xf32>
    %c0_1 = arith.constant 0 : index
    %c0_2 = arith.constant 0 : index
    %1 = vector.load %arg2[%c0_1, %c0_2] : memref<8x256xf32, #tpu.memory_space<vmem>>, vector<8x256xf32>
    tpu.vector_store %arg2[%c0_1, %c0_2], %0 {strides = array<i32>} : memref<8x256xf32, #tpu.memory_space<vmem>>, vector<8x256xf32>,
    return
  }
  func.func @transform_0(%arg0: i32) -> (i32, i32) {
    %c0_i32 = arith.constant 0 : i32
    %c0_i32_0 = arith.constant 0 : i32
    return %arg0, %c0_i32 : i32, i32
  }
  func.func @transform_1(%arg0: i32) -> (i32, i32) {
    %c0_i32 = arith.constant 0 : i32
    %c0_i32_0 = arith.constant 0 : i32
    return %arg0, %c0_i32 : i32, i32
  }
}

</mosaic_0001>

<bundles_post_ra>
// kernel: tpu_custom_call.1
= control target key start
LH: loop header
LB: loop body
LE: loop exit
PB: predicated region body
PF: predicated region fallthrough
CT: control target
= control target key end

     0   :  { %6 = vsyncpa [#allocation3], 0  ;;  %s116_s0 = inlined_call_operand.hbm [shape: f32[8,256], index: 0, kind: input, shape index: {}]   ;;  %s117_s1 = inlined_call_operand.hbm [shape: f32[8,256], index: 1, kind: output, shape index: {}]  }
   0x1   :  { %7 = vsyncpa [#allocation4], 0  ;;  %s13_s8 = sshll.u32 %s116_s0, 4  ;;  %s98_s9 = smov [#allocation2]   ;;  %s14_s8 = int_to_ptr.hbm [resolvable:$true] %s13_s8 }
   0x2   :  { %s15_s10 = sshll.u32 %s98_s9, 4  ;;  %s16_s10 = int_to_ptr.vmem [resolvable:$true] %s15_s10 }
   0x3   :  { %18 = dma.hbm_to_vmem [thread:$0]  %s14_s8, 256, %s16_s10, [#allocation3]  }
   0x4   :  { %94 = dma.done.wait [#allocation3], 256  }
   0x5   :  { %95 = vsyncadd [#allocation3], 4294967040  ;;  %s99_s11 = smov [#allocation5]   ;;  %s34_s15 = sshll.u32 %s117_s1, 4  ;;  %v23_v0 = vld [vmem:[#allocation2] sm:$0xff]  ;;  %v24_v1 = vld [vmem:[#allocation2 + $0x8] sm:$0xff]  ;;  %s35_s15 = int_to_ptr.hbm [resolvable:$true] %s34_s15 }
   0x6   :  { %s32_s12 = sshll.u32 %s99_s11, 4  ;;  %25 = vst [vmem:[#allocation5] sm:$0xff] %v23_v0  ;;  %s33_s12 = int_to_ptr.vmem [resolvable:$true] %s32_s12 }
   0x7   :  { %26 = vst [vmem:[#allocation5 + $0x8] sm:$0xff] %v24_v1 }
   0x8   :  { %37 = dma.vmem_to_hbm [thread:$0]  %s33_s12, 256, %s35_s15, [#allocation4]  }
   0x9   :  { %96 = dma.done.wait [#allocation4], 256  }
   0xa   :  { %97 = vsyncadd [#allocation4], 4294967040 }
   0xb   :  { %42 = vsyncpa [#allocation3], 1 }
   0xc   :  { %43 = vsyncpa [#allocation4], 1 }

</bundles_post_ra>
